<compile_context>
chip_gen: v7x
topology: tpu7x:2x2x1
jax: 0.10.0
libtpu: 0.0.40
codegen_flags: <defaults>
</compile_context>

<pallas_src>
import math

import jax
import jax.numpy as jnp
from jax.experimental import pallas as pl
from jax.experimental.pallas import tpu as pltpu


def _round_up(a, b):
    return (a + b - 1) // b * b


def _tpu_vmem_capacity_bytes():
    """Best-effort per-core VMEM capacity with safe fallbacks."""
    kind = ""
    try:
        kind = jax.devices()[0].device_kind.lower()
    except Exception:
        pass
    is_v7 = ("v7" in kind) or ("tpu7" in kind)
    try:
        cap = int(pltpu.get_tpu_info().vmem_capacity_bytes)
        if cap > 0:
            return cap
    except Exception:
        pass
    return (64 << 20) if is_v7 else (128 << 20)


def _mlp_kernel(x_ref, wu_ref, bu_ref, wd_ref, bd_ref, o_ref, acc_ref):
    """One (row-block, hidden-chunk) grid step.

    x_ref : (tm, E)  compute dtype (bf16)
    wu_ref: (E, th)  compute dtype
    bu_ref: (1, th)  f32
    wd_ref: (th, E)  compute dtype
    bd_ref: (1, E)   f32
    o_ref : (tm, E)  output dtype
    acc_ref: (tm, E) f32 VMEM scratch (down-proj accumulator across hidden chunks)
    """
    h_idx = pl.program_id(1)

    # Up projection for this hidden chunk: (tm, E) @ (E, th) -> (tm, th), f32 acc on MXU.
    h = jnp.dot(x_ref[...], wu_ref[...], preferred_element_type=jnp.float32)
    h = h + bu_ref[...]                                   # (1, th) broadcasts over rows
    # Exact (erf-based) GELU, matching torch.nn.GELU() defaults; kept in f32
    # (proven Mosaic lowering; v5e has no bf16 VPU/EUP path anyway).
    g = 0.5 * h * (1.0 + jax.lax.erf(h * (1.0 / math.sqrt(2.0))))
    # Down projection chunk: (tm, th) @ (th, E) -> (tm, E), f32 accumulation.
    d = jnp.dot(g.astype(wd_ref.dtype), wd_ref[...],
                preferred_element_type=jnp.float32)

    @pl.when(h_idx == 0)
    def _init():
        # Fold b_down into the first chunk's store: no zero-init, no extra RMW.
        acc_ref[...] = d + bd_ref[...]

    @pl.when(h_idx > 0)
    def _accumulate():
        acc_ref[...] = acc_ref[...] + d

    @pl.when(h_idx == pl.num_programs(1) - 1)
    def _finalize():
        # TODO(synk): training-mode dropout (random mask via pltpu.prng_random_bits)
        # not wired in; eval semantics (p = 0) -> identity.
        o_ref[...] = acc_ref[...].astype(o_ref.dtype)


def mlp_forward(x, w_up, b_up, w_down, b_down, *,
                block_rows=512, block_hidden=None,
                compute_dtype=jnp.bfloat16):
    """nanoGPT MLP forward.

    x: (N, E). w_up: (E, H), b_up: (H,), w_down: (H, E), b_down: (E,), H = 4*E.
    Matmuls run in `compute_dtype` (bf16) with f32 accumulation; output dtype == x.dtype.
    """
    N, E = x.shape
    Ew, H = w_up.shape
    assert Ew == E and w_down.shape == (H, E)
    assert b_up.shape == (H,) and b_down.shape == (E,)
    out_dtype = x.dtype

    vmem_cap = _tpu_vmem_capacity_bytes()
    cbytes = jnp.dtype(compute_dtype).itemsize
    obytes = jnp.dtype(out_dtype).itemsize

    # ---- row (token) tiling: multiples of 16 (bf16 sublane packing) ----
    tm = min(block_rows, _round_up(N, 16))
    if N > 256 and _round_up(N, tm) // tm < 2:
        # Give megacore / both v7x TensorCores at least two row blocks.
        tm = _round_up(-(-N // 2), 16)
    n_pad = _round_up(N, tm)
    n_row_blocks = n_pad // tm

    # ---- hidden-dim chunking sized against this chip's VMEM ----
    def vmem_est(th):
        resident = (th == H)
        w_bufs = 1 if resident else 2
        return (2 * tm * E * cbytes            # x tile (double-buffered)
                + 2 * tm * E * obytes          # out tile (double-buffered)
                + w_bufs * E * th * cbytes     # W_up block(s)
                + w_bufs * th * E * cbytes     # W_down block(s)
                + w_bufs * th * 4 + E * 4      # bias blocks (f32)
                + tm * E * 4                   # f32 accumulator scratch
                + tm * th * (4 + cbytes))      # f32 GELU intermediate + bf16 cast copy

    vmem_budget = int(0.70 * vmem_cap)

    def _choose_th():
        if H % 128 != 0:
            return H                           # tiny/odd hidden dims: keep resident
        cap = block_hidden if block_hidden is not None else H
        divs = [d for d in range(128, H + 1, 128) if H % d == 0 and d <= cap]
        if not divs:
            divs = [128]
        fitting = [d for d in divs if vmem_est(d) <= vmem_budget]
        pool = fitting if fitting else [min(divs)]
        # Prefer 512- then 256-multiples: the v6e/v7x MXUs are 256 wide.
        for mult in (512, 256, 128):
            cand = [d for d in pool if d % mult == 0]
            if cand:
                return max(cand)
        return max(pool)

    th = _choose_th()
    n_h = H // th
    weights_resident = (n_h == 1)

    xp = x if n_pad == N else jnp.pad(x, ((0, n_pad - N), (0, 0)))
    xp = xp.astype(compute_dtype)
    wu = w_up.astype(compute_dtype)
    wd = w_down.astype(compute_dtype)
    bu = b_up.reshape(1, H).astype(jnp.float32)
    bd = b_down.reshape(1, E).astype(jnp.float32)

    grid = (n_row_blocks, n_h)

    # ---- VMEM limit: estimate * headroom, clamped to 75% of physical per-core VMEM ----
    est = vmem_est(th)
    vmem_limit = int(min(max(int(est * 1.4) + (2 << 20), 32 << 20),
                         int(0.75 * vmem_cap)))

    def _wspec(shape, index_map, constant):
        # Blocks whose index never changes don't need double buffering.
        if constant:
            return pl.BlockSpec(shape, index_map, pipeline_mode=pl.Buffered(1))
        return pl.BlockSpec(shape, index_map)

    weight_bytes = (1 if weights_resident else n_row_blocks) * 2 * E * H * cbytes
    cost = pl.CostEstimate(
        flops=4 * n_pad * E * H,               # two matmuls: 2*N*E*H each
        transcendentals=n_pad * H,             # one erf per hidden activation
        bytes_accessed=int(n_pad * E * (cbytes + obytes) + weight_bytes + (H + E) * 4),
    )

    out = pl.pallas_call(
        _mlp_kernel,
        out_shape=jax.ShapeDtypeStruct((n_pad, E), out_dtype),
        grid_spec=pltpu.PrefetchScalarGridSpec(
            num_scalar_prefetch=0,
            grid=grid,
            in_specs=[
                pl.BlockSpec((tm, E), lambda i, h: (i, 0)),                    # x tile
                _wspec((E, th), lambda i, h: (0, h), weights_resident),        # W_up chunk
                _wspec((1, th), lambda i, h: (0, h), weights_resident),        # b_up chunk
                _wspec((th, E), lambda i, h: (h, 0), weights_resident),        # W_down chunk
                _wspec((1, E), lambda i, h: (0, 0), True),                     # b_down
            ],
            out_specs=pl.BlockSpec((tm, E), lambda i, h: (i, 0)),
            scratch_shapes=[pltpu.VMEM((tm, E), jnp.float32)],
        ),
        compiler_params=pltpu.CompilerParams(
            dimension_semantics=("parallel", "arbitrary"),
            vmem_limit_bytes=vmem_limit,
        ),
        cost_estimate=cost,
    )(xp, wu, bu, wd, bd)

    return out[:N] if n_pad != N else out


def mlp_reference(x, w_up, b_up, w_down, b_down):
    h = x @ w_up + b_up
    h = 0.5 * h * (1.0 + jax.lax.erf(h / jnp.sqrt(2.0).astype(h.dtype)))
    return h @ w_down + b_down


def _make_params(key, n_embed):
    hidden = 4 * n_embed
    k1, k2, k3, k4 = jax.random.split(key, 4)
    lim_up = 1.0 / math.sqrt(n_embed)
    lim_dn = 1.0 / math.sqrt(hidden)
    # stored already-transposed relative to PyTorch's (out, in) convention
    w_up = jax.random.uniform(k1, (n_embed, hidden), jnp.float32, -lim_up, lim_up)
    b_up = jax.random.uniform(k2, (hidden,), jnp.float32, -lim_up, lim_up)
    w_down = jax.random.uniform(k3, (hidden, n_embed), jnp.float32, -lim_dn, lim_dn)
    b_down = jax.random.uniform(k4, (n_embed,), jnp.float32, -lim_dn, lim_dn)
    return w_up, b_up, w_down, b_down


if __name__ == "__main__":
    key = jax.random.PRNGKey(0)
    kx1, kp1, kx2, kp2 = jax.random.split(key, 4)

    # Config 1: lane-dense E (multiple of 128); block_hidden cap forces the hidden-dim
    # streaming path (2 H-chunks, f32 accumulator + folded b_down init).
    B, T, E = 2, 8, 128
    x = jax.random.normal(kx1, (B, T, E), dtype=jnp.float32)
    w_up, b_up, w_down, b_down = _make_params(kp1, E)
    x2d = x.reshape(B * T, E)
    out = mlp_forward(x2d, w_up, b_up, w_down, b_down, block_hidden=256)
    jax.block_until_ready(out)
    ref = mlp_reference(x2d, w_up, b_up, w_down, b_down)
    assert out.shape == ref.shape
    assert jnp.allclose(out, ref, atol=2e-2, rtol=2e-2), "config-1 mismatch vs reference"

    # Config 2: ragged token count (N=10 -> padded to 16) + fully weight-resident path
    # (single H chunk, resident blocks single-buffered).
    B2, T2, E2 = 2, 5, 128
    x_b = jax.random.normal(kx2, (B2, T2, E2), dtype=jnp.float32)
    wu2, bu2, wd2, bd2 = _make_params(kp2, E2)
    x2d_b = x_b.reshape(B2 * T2, E2)
    out2 = mlp_forward(x2d_b, wu2, bu2, wd2, bd2)
    jax.block_until_ready(out2)
    ref2 = mlp_reference(x2d_b, wu2, bu2, wd2, bd2)
    assert out2.shape == ref2.shape
    assert jnp.allclose(out2, ref2, atol=2e-2, rtol=2e-2), "config-2 mismatch vs reference"

    print("KERNEL_OK")
</pallas_src>

<mosaic_0001>
module attributes {stable_mosaic.version = 11 : i64} {
  func.func @_mlp_kernel(%arg0: i32, %arg1: i32, %arg2: memref<16x128xbf16, #tpu.memory_space<vmem>>, %arg3: memref<128x256xbf16, #tpu.memory_space<vmem>>, %arg4: memref<1x256xf32, #tpu.memory_space<vmem>>, %arg5: memref<256x128xbf16, #tpu.memory_space<vmem>>, %arg6: memref<1x128xf32, #tpu.memory_space<vmem>>, %arg7: memref<16x128xf32, #tpu.memory_space<vmem>>, %arg8: memref<16x128xf32, #tpu.memory_space<vmem>>) attributes {dimension_semantics = [#tpu.dimension_semantics<parallel>, #tpu.dimension_semantics<arbitrary>], iteration_bounds = array<i64: 1, 2>, scalar_prefetch = 0 : i64, scratch_operands = 1 : i64, tpu.core_type = #tpu.core_type<tc>, window_params = [{transform_indices = @transform_0, window_bounds = array<i64: 16, 128>}, {transform_indices = @transform_1, window_bounds = array<i64: 128, 256>}, {transform_indices = @transform_2, window_bounds = array<i64: 1, 256>}, {transform_indices = @transform_3, window_bounds = array<i64: 256, 128>}, {pipeline_mode = #tpu.pipeline_mode<synchronous>, transform_indices = @transform_4, window_bounds = array<i64: 1, 128>}, {transform_indices = @transform_5, window_bounds = array<i64: 16, 128>}]} {
    %c0 = arith.constant 0 : index
    %c0_0 = arith.constant 0 : index
    %0 = vector.load %arg2[%c0, %c0_0] : memref<16x128xbf16, #tpu.memory_space<vmem>>, vector<16x128xbf16>
    %c0_1 = arith.constant 0 : index
    %c0_2 = arith.constant 0 : index
    %1 = vector.load %arg3[%c0_1, %c0_2] : memref<128x256xbf16, #tpu.memory_space<vmem>>, vector<128x256xbf16>
    %cst = arith.constant dense<0.000000e+00> : vector<16x256xf32>
    %2 = tpu.matmul %0, %1, %cst {dimension_numbers = #tpu.dot_dimension_numbers<[1], [0], [0], [1], [0, 0, 1, 1], [], []>} : vector<16x128xbf16>, vector<128x256xbf16>, vector<16x256xf32> -> vector<16x256xf32>
    %c0_3 = arith.constant 0 : index
    %c0_4 = arith.constant 0 : index
    %3 = vector.load %arg4[%c0_3, %c0_4] : memref<1x256xf32, #tpu.memory_space<vmem>>, vector<1x256xf32>
    %4 = vector.broadcast %3 : vector<1x256xf32> to vector<16x256xf32>
    %5 = arith.addf %2, %4 : vector<16x256xf32>
    %cst_5 = arith.constant 5.000000e-01 : f32
    %6 = vector.broadcast %cst_5 : f32 to vector<16x256xf32>
    %7 = arith.mulf %6, %5 : vector<16x256xf32>
    %cst_6 = arith.constant 0.707106769 : f32
    %8 = vector.broadcast %cst_6 : f32 to vector<16x256xf32>
    %9 = arith.mulf %5, %8 : vector<16x256xf32>
    %10 = math.erf %9 : vector<16x256xf32>
    %cst_7 = arith.constant 1.000000e+00 : f32
    %11 = vector.broadcast %cst_7 : f32 to vector<16x256xf32>
    %12 = arith.addf %11, %10 : vector<16x256xf32>
    %13 = arith.mulf %7, %12 : vector<16x256xf32>
    %14 = arith.truncf %13 : vector<16x256xf32> to vector<16x256xbf16>
    %c0_8 = arith.constant 0 : index
    %c0_9 = arith.constant 0 : index
    %15 = vector.load %arg5[%c0_8, %c0_9] : memref<256x128xbf16, #tpu.memory_space<vmem>>, vector<256x128xbf16>
    %cst_10 = arith.constant dense<0.000000e+00> : vector<16x128xf32>
    %16 = tpu.matmul %14, %15, %cst_10 {dimension_numbers = #tpu.dot_dimension_numbers<[1], [0], [0], [1], [0, 0, 1, 1], [], []>} : vector<16x256xbf16>, vector<256x128xbf16>, vector<16x128xf32> -> vector<16x128xf32>
    %c0_i32 = arith.constant 0 : i32
    %17 = arith.cmpi eq, %arg1, %c0_i32 : i32
    %18 = arith.extui %17 : i1 to i32
    %c0_i32_11 = arith.constant 0 : i32
    %19 = arith.cmpi ne, %18, %c0_i32_11 : i32
    scf.if %19 {
      %c0_15 = arith.constant 0 : index
      %c0_16 = arith.constant 0 : index
      %26 = vector.load %arg6[%c0_15, %c0_16] : memref<1x128xf32, #tpu.memory_space<vmem>>, vector<1x128xf32>
      %27 = vector.broadcast %26 : vector<1x128xf32> to vector<16x128xf32>
      %28 = arith.addf %16, %27 : vector<16x128xf32>
      %c0_17 = arith.constant 0 : index
      %c0_18 = arith.constant 0 : index
      %29 = vector.load %arg8[%c0_17, %c0_18] : memref<16x128xf32, #tpu.memory_space<vmem>>, vector<16x128xf32>
      tpu.vector_store %arg8[%c0_17, %c0_18], %28 {strides = array<i32>} : memref<16x128xf32, #tpu.memory_space<vmem>>, vector<16x128xf32>,
    } else {
    }
    %c0_i32_12 = arith.constant 0 : i32
    %20 = arith.cmpi sgt, %arg1, %c0_i32_12 : i32
    %21 = arith.extui %20 : i1 to i32
    %c0_i32_13 = arith.constant 0 : i32
    %22 = arith.cmpi ne, %21, %c0_i32_13 : i32
    scf.if %22 {
      %c0_15 = arith.constant 0 : index
      %c0_16 = arith.constant 0 : index
      %26 = vector.load %arg8[%c0_15, %c0_16] : memref<16x128xf32, #tpu.memory_space<vmem>>, vector<16x128xf32>
      %27 = arith.addf %26, %16 : vector<16x128xf32>
      %c0_17 = arith.constant 0 : index
      %c0_18 = arith.constant 0 : index
      %28 = vector.load %arg8[%c0_17, %c0_18] : memref<16x128xf32, #tpu.memory_space<vmem>>, vector<16x128xf32>
      tpu.vector_store %arg8[%c0_17, %c0_18], %27 {strides = array<i32>} : memref<16x128xf32, #tpu.memory_space<vmem>>, vector<16x128xf32>,
    } else {
    }
    %c1_i32 = arith.constant 1 : i32
    %23 = arith.cmpi eq, %arg1, %c1_i32 : i32
    %24 = arith.extui %23 : i1 to i32
    %c0_i32_14 = arith.constant 0 : i32
    %25 = arith.cmpi ne, %24, %c0_i32_14 : i32
    scf.if %25 {
      %c0_15 = arith.constant 0 : index
      %c0_16 = arith.constant 0 : index
      %26 = vector.load %arg8[%c0_15, %c0_16] : memref<16x128xf32, #tpu.memory_space<vmem>>, vector<16x128xf32>
      %c0_17 = arith.constant 0 : index
      %c0_18 = arith.constant 0 : index
      %27 = vector.load %arg7[%c0_17, %c0_18] : memref<16x128xf32, #tpu.memory_space<vmem>>, vector<16x128xf32>
      tpu.vector_store %arg7[%c0_17, %c0_18], %26 {strides = array<i32>} : memref<16x128xf32, #tpu.memory_space<vmem>>, vector<16x128xf32>,
    } else {
    }
    return
  }
  func.func @transform_0(%arg0: i32, %arg1: i32) -> (i32, i32) {
    %c0_i32 = arith.constant 0 : i32
    %c0_i32_0 = arith.constant 0 : i32
    return %arg0, %c0_i32 : i32, i32
  }
  func.func @transform_1(%arg0: i32, %arg1: i32) -> (i32, i32) {
    %c0_i32 = arith.constant 0 : i32
    %c0_i32_0 = arith.constant 0 : i32
    return %c0_i32, %arg1 : i32, i32
  }
  func.func @transform_2(%arg0: i32, %arg1: i32) -> (i32, i32) {
    %c0_i32 = arith.constant 0 : i32
    %c0_i32_0 = arith.constant 0 : i32
    return %c0_i32, %arg1 : i32, i32
  }
  func.func @transform_3(%arg0: i32, %arg1: i32) -> (i32, i32) {
    %c0_i32 = arith.constant 0 : i32
    %c0_i32_0 = arith.constant 0 : i32
    return %arg1, %c0_i32 : i32, i32
  }
  func.func @transform_4(%arg0: i32, %arg1: i32) -> (i32, i32) {
    %c0_i32 = arith.constant 0 : i32
    %c0_i32_0 = arith.constant 0 : i32
    %c0_i32_1 = arith.constant 0 : i32
    return %c0_i32, %c0_i32_0 : i32, i32
  }
  func.func @transform_5(%arg0: i32, %arg1: i32) -> (i32, i32) {
    %c0_i32 = arith.constant 0 : i32
    %c0_i32_0 = arith.constant 0 : i32
    return %arg0, %c0_i32 : i32, i32
  }
}

</mosaic_0001>

<bundles_post_ra>
// kernel: tpu_custom_call.1
= control target key start
LH: loop header
LB: loop body
LE: loop exit
PB: predicated region body
PF: predicated region fallthrough
CT: control target
= control target key end

     0   :  { %s1537_s0 = inlined_call_operand.hbm [shape: bf16[16,128], index: 0, kind: input, shape index: {}]   ;;  %s1538_s1 = inlined_call_operand.hbm [shape: bf16[128,512], index: 1, kind: input, shape index: {}]   ;;  %s1539_s2 = inlined_call_operand.vmem [shape: f32[1,512], index: 2, kind: input, shape index: {}]   ;;  %s1540_s3 = inlined_call_operand.hbm [shape: bf16[512,128], index: 3, kind: input, shape index: {}]   ;;  %s1541_s4 = inlined_call_operand.vmem [shape: f32[1,128], index: 4, kind: input, shape index: {}]   ;;  %s1542_s5 = inlined_call_operand.hbm [shape: f32[16,128], index: 5, kind: output, shape index: {}]  }
   0x1   :  { %1549 = sst [smem:[#allocation13_spill]] %s1538_s1 }
   0x2   :  { %10 = vsyncpa [#allocation4], 0 }
   0x3   :  { %11 = vsyncpa [#allocation7], 0 }
   0x4   :  { %13 = vsyncpa [#allocation7 + $0x1], 0 }
   0x5   :  { %14 = vsyncpa [#allocation5], 0  ;;  %s1262_s18 = smov 0   ;;  %s1264_s19 = smov 0  }
   0x6   :  { %s1266_s20 = smov 0   ;;  %s1268_s21 = smov 0  }
   0x7   :  { %s1270_s22 = smov 0   ;;  %s1272_s23 = smov 0  }
   0x8 LB: > { %s29_s24 = sadd.s32 1, %s1214_s22  ;;  %s65_s25 = sadd.s32 1, %s1206_s20  ;;  %s1218_s23 = sphi %s1272_s23, %s20_s23   ;;  %s1214_s22 = sphi %s1270_s22, %s1566_s22   ;;  %s1210_s21 = sphi %s1268_s21, %s1565_s21   ;;  %s1206_s20 = sphi %s1266_s20, %s1564_s20   ;;  %s1202_s19 = sphi %s1264_s19, %s1563_s19   ;;  %s1198_s18 = sphi %s1262_s18, %s1562_s18  }
   0x9   : > { %p30_p0 = scmp.ge.s32.totalorder %s29_s24, 2  ;;  %p72_p1 = scmp.ne.s32.totalorder %s1206_s20, %s1202_s19 }
   0xa   : > { %p73_p2 = scmp.eq.s32.totalorder %s1218_s23, 0  ;;  %p935_p4 = scmp.lt.s32.totalorder %s1218_s23, 2 }
   0xb   : > { %s1568_s24 = smov (%p30_p0, %s29_s24), 0  ;;  %s220_s27 = sand.u32 1, %s1218_s23  }
   0xc   : > { %p74_p3 = por %p73_p2, %p72_p1  ;;  %s62_s26 = ssub.s32 %s1214_s22, %s1568_s24 }
   0xd   : > { %p63_p5 = scmp.eq.s32.totalorder %s62_s26, 0  ;;  %s222_s28 = sand.u32 1, %s1206_s20  }
   0xe   : > { %s887_s29 = sshll.u32 %s1214_s22, 7  ;;  %s1308_s6 = sshll.u32 %s222_s28, 7 }
   0xf   : > { %s1306_s30 = scalar_select %p63_p5, %s1206_s20, %s65_s25  }
  0x10   : > { %s1550_s1 = sld [smem:[#allocation13_spill]]  ;;  %p1315_p6 = pnand %p935_p4, %p74_p3 }
  0x11   : > { %s224_s11 = scalar_lea.vmem [#allocation6], %s1308_s6  ;;  %s1322_s13 = scalar_lea.sflag [#allocation7], %s220_s27 }
  0x12   : > { %s1551_s10 = scalar_select %p1315_p6, 1, 0 }
  0x13   : > { %s231_s12 = sshll.u32 %s224_s11, 4  ;;  %p1544_p8 = pneg %p1315_p6  ;;  %s1320_s12 = int_to_ptr.vmem [resolvable:$true] %s231_s12 }
  0x16   : > { %s1313_s9 = scalar_lea.hbm %s1550_s1, %s887_s29  ;;  %s1051_s17 = scalar_lea.hbm %s1550_s1, 4096 }
  0x17   : > { %s1046_s14 = scalar_lea.hbm %s1313_s9, 2048  ;;  %p1052_p11 = scmp.lt.u32.totalorder %s1313_s9, %s1550_s1 }
  0x18   : > { %p1047_p7 = scmp.ne.s32.totalorder %s1313_s9, %s1046_s14  ;;  %p1053_p12 = scmp.lt.u32.totalorder %s1051_s17, %s1046_s14 }
  0x19   : > { %p1055_p0 = scmp.lt.u32.totalorder %s1046_s14, %s1313_s9 }
  0x1a   : > { %p1049_p9 = pnand %p1544_p8, %p1047_p7  ;;  %p1054_p13 = por %p1053_p12, %p1052_p11 }
  0x1c   : > { %p1050_p10 = pneg %p1049_p9  ;;  %p1056_p1 = por %p1055_p0, %p1054_p13 }
  0x1e   : > { %p1057_p2 = pnand %p1056_p1, %p1050_p10 }
  0x20   : > { %1060 = shalt.err (!%p1057_p2)
}
  0x21   : > { %s1061_s27 = scalar_lea.vmem %s1320_s12, 2048  ;;  %s1220_s28 = smov [#allocation6]  }
  0x22   : > { %p1062_p3 = scmp.ne.s32.totalorder %s1320_s12, %s1061_s27  ;;  %s1066_s29 = sshll.u32 %s1220_s28, 4  ;;  %s1067_s29 = int_to_ptr.vmem [resolvable:$false] %s1066_s29 }
  0x23   : > { %s1068_s7 = scalar_lea.vmem %s1067_s29, 4096  ;;  %p1069_p7 = scmp.lt.s32.totalorder %s1320_s12, %s1067_s29 }
  0x24   : > { %p1064_p4 = pnand %p1062_p3, %p1544_p8  ;;  %p1070_p9 = scmp.lt.s32.totalorder %s1068_s7, %s1061_s27 }
  0x26   : > { %p1065_p5 = pneg %p1064_p4  ;;  %p1071_p11 = por %p1070_p9, %p1069_p7 }
  0x28   : > { %p1072_p12 = pnand %p1071_p11, %p1065_p5 }
  0x2a   : > { %1075 = shalt.err (!%p1072_p12)
}
  0x2b   : > { %s1221_s8 = smov 256   ;;  %s1222_s11 = smov 128  }
  0x2c   : > { %s1223_s14 = smov 8   ;;  %s1351_s15 = sadd.s32 4294967295, %s1218_s23  }
  0x2d   : > { %930 = dma.hbm_to_vmem [thread:$0]  (!%p1315_p6), %s1313_s9, 2048, %s1320_s12, %s1322_s13, %s1221_s8, %s1222_s11, %s1223_s14  }
  0x2e   : > { %p78_p10 = scmp.ne.s32.totalorder %s1202_s19, %s1198_s18  ;;  %p1543_p13 = scmp.eq.s32.totalorder %s1351_s15, 0 }
  0x2f   : > { %p832_p0 = scmp.ge.s32.totalorder %s1218_s23, 1  ;;  %p188_p1 = scmp.lt.s32.totalorder %s1218_s23, 3 }
  0x30   : > { %p1360_p2 = por %p1543_p13, %p78_p10  ;;  %s1224_s9 = smov [#allocation3]  }
  0x31   : > { %p1364_p3 = pnand %p832_p0, %p188_p1  ;;  %s203_s12 = sshll.u32 %s1224_s9, 4  ;;  %s1368_s12 = int_to_ptr.vmem [resolvable:$true] %s203_s12 }
  0x32   : > { %s1552_s16 = scalar_select %p1360_p2, 1, 0 }
  0x33   : > { %s1553_s17 = scalar_select %p1364_p3, 1, 0 }
  0x34   : > { %p923_p4 = pneg %p1364_p3  ;;  %s888_s18 = sshll.u32 %s1214_s22, 11 }
  0x35   : > { %s1382_s28 = scalar_lea.hbm %s1540_s3, %s888_s18  ;;  %s253_s29 = scalar_lea.vmem [#allocation8], %s1308_s6 }
  0x36   : > { %p1375_p5 = pnand %p923_p4, %p1543_p13  ;;  %s260_s7 = sshll.u32 %s253_s29, 4  ;;  %s1385_s7 = int_to_ptr.vmem [resolvable:$true] %s260_s7 }
  0x37   : > { %s1076_s14 = scalar_lea.hbm %s1537_s0, 128 }
  0x38   : > { %p1077_p7 = scmp.ne.s32.totalorder %s1537_s0, %s1076_s14  ;;  %p1078_p9 = pneg %p1375_p5 }
  0x39   : > { %p1083_p10 = scmp.lt.u32.totalorder %s1076_s14, %s1537_s0 }
  0x3a   : > { %p1079_p11 = pnand %p1078_p9, %p1077_p7 }
  0x3c   : > { %p1080_p12 = pneg %p1079_p11 }
  0x3e   : > { %p1085_p0 = pnand %p1083_p10, %p1080_p12 }
  0x40   : > { %1088 = shalt.err (!%p1085_p0)
}
  0x41   : > { %s1089_s6 = scalar_lea.vmem %s1368_s12, 128  ;;  %p1097_p8 = scmp.lt.s32.totalorder %s1368_s12, %s1368_s12 }
  0x42   : > { %p1090_p1 = scmp.ne.s32.totalorder %s1368_s12, %s1089_s6  ;;  %p1098_p2 = scmp.lt.s32.totalorder %s1089_s6, %s1089_s6 }
  0x44   : > { %p1092_p4 = pnand %p1090_p1, %p1078_p9  ;;  %p1099_p3 = por %p1098_p2, %p1097_p8 }
  0x46   : > { %p1093_p13 = pneg %p1092_p4 }
  0x48   : > { %p1100_p6 = pnand %p1099_p3, %p1093_p13 }
  0x4a   : > { %1103 = shalt.err (!%p1100_p6)
}
  0x4b   : > { %s1225_s1 = smov 64   ;;  %s1226_s18 = smov 4  }
  0x4c   : > { %926 = dma.hbm_to_vmem [thread:$0]  (!%p1375_p5), %s1537_s0, 128, %s1368_s12, [#allocation4], %s1225_s1, %s1225_s1, %s1226_s18  }
  0x4d   : > { %s1104_s11 = scalar_lea.hbm %s1382_s28, 2048  ;;  %p1555_p6 = scmp.ne.s32.totalorder %s1551_s10, 0 }
  0x4e   : > { %p1105_p8 = scmp.ne.s32.totalorder %s1382_s28, %s1104_s11  ;;  %s1109_s26 = scalar_lea.hbm %s1540_s3, 4096 }
  0x4f   : > { %p1556_p13 = pneg %p1555_p6  ;;  %p1110_p7 = scmp.lt.u32.totalorder %s1382_s28, %s1540_s3 }
  0x50   : > { %p1111_p9 = scmp.lt.u32.totalorder %s1109_s26, %s1104_s11  ;;  %p1113_p12 = scmp.lt.u32.totalorder %s1104_s11, %s1382_s28 }
  0x51   : > { %p1107_p2 = pnand %p1105_p8, %p1556_p13 }
  0x52   : > { %p1112_p11 = por %p1111_p9, %p1110_p7 }
  0x53   : > { %p1108_p3 = pneg %p1107_p2 }
  0x54   : > { %p1114_p10 = por %p1113_p12, %p1112_p11 }
  0x56   : > { %p1115_p0 = pnand %p1114_p10, %p1108_p3 }
  0x58   : > { %1118 = shalt.err (!%p1115_p0)
}
  0x59   : > { %s1119_s12 = scalar_lea.vmem %s1385_s7, 2048  ;;  %p1557_p1 = pmov %p1556_p13 }
  0x5a   : > { %p1120_p5 = scmp.ne.s32.totalorder %s1385_s7, %s1119_s12  ;;  %s1227_s25 = smov [#allocation8]  }
  0x5b   : > { %s1124_s29 = sshll.u32 %s1227_s25, 4  ;;  %s1125_s29 = int_to_ptr.vmem [resolvable:$false] %s1124_s29 }
  0x5c   : > { %p1122_p4 = pnand %p1120_p5, %p1557_p1  ;;  %s1126_s8 = scalar_lea.vmem %s1125_s29, 4096 }
  0x5d   : > { %p1127_p13 = scmp.lt.s32.totalorder %s1385_s7, %s1125_s29  ;;  %p1128_p2 = scmp.lt.s32.totalorder %s1126_s8, %s1119_s12 }
  0x5e   : > { %p1123_p8 = pneg %p1122_p4 }
  0x5f   : > { %p1129_p7 = por %p1128_p2, %p1127_p13 }
  0x61   : > { %p1130_p9 = pnand %p1129_p7, %p1123_p8 }
  0x63   : > { %1133 = shalt.err (!%p1130_p9)
}
  0x64   : > { %933 = dma.hbm_to_vmem [thread:$0]  (!%p1555_p6), %s1382_s28, 2048, %s1385_s7, %s1322_s13, %s1225_s1, %s1225_s1, %s1226_s18  }
  0x65   : > { %p1558_p3 = scmp.ne.s32.totalorder %s1553_s17, 0 }
  0x66   : > { %p1559_p11 = scmp.eq.s32.totalorder (!%p1558_p3), %s1351_s15, 0 }
  0x67   : > { %272 = sbr.rel (%p1558_p3) target bundleno = 651 (0x28b), region = 40 }
  0x6e   : > { %1185 = dma.done.wait (%p1559_p11), [#allocation4], 128   ;;  %p1560_p12 = pmov %p1559_p11 }
  0x6f   : > { %s278_s10 = sand.u32 1, %s1351_s15   ;;  %s280_s11 = sand.u32 1, %s1202_s19  }
  0x70   : > { %1187 = vsyncadd (%p1560_p12), [#allocation4], 4294967168  ;;  %s843_s14 = sshll.u32 %s280_s11, 7  ;;  %s279_s9 = scalar_lea.sflag [#allocation7], %s278_s10 }
  0x71   : > { %s1446_s26 = scalar_lea.vmem [#allocation6], %s843_s14  ;;  %p1561_p10 = scmp.ne.s32.totalorder %s1552_s16, 0 }
  0x73   : > { %1189 = dma.done.wait (%p1561_p10), %s279_s9, 4096  }
  0x74   : > { %1191 = vsyncadd (%p1561_p10), %s279_s9, 4294963200  ;;  %v1228_v0 = vmov 0   ;;  %v997_v1 = vld [vmem:[%s1446_s26 + $0x4] ss:$8 sps:$4 sm:$0xff]   ;;  %v999_v2 = vld [vmem:[%s1446_s26] ss:$8 sps:$4 sm:$0xff]   ;;  %v352_v34 = vlaneseq }
  0x75   : > { %480 = vmatprep.mubr.bf16.mxu0 %v1228_v0  ;;  %448 = vmatprep.subr.bf16.mxu0 %v997_v1  ;;  %v1000_v3 = vld [vmem:[%s1446_s26 + $0x14] ss:$8 sps:$4 sm:$0xff]   ;;  %v1002_v4 = vld [vmem:[%s1446_s26 + $0x10] ss:$8 sps:$4 sm:$0xff]   ;;  %v1003_v5 = vld [vmem:[%s1446_s26 + $0x24] ss:$8 sps:$4 sm:$0xff]  }
  0x76   : > { %449 = vmatpush1.bf16.msra.mxu0 %v999_v2  ;;  %v1005_v6 = vld [vmem:[%s1446_s26 + $0x20] ss:$8 sps:$4 sm:$0xff]   ;;  %v1006_v7 = vld [vmem:[%s1446_s26 + $0x34] ss:$8 sps:$4 sm:$0xff]   ;;  %v1008_v8 = vld [vmem:[%s1446_s26 + $0x30] ss:$8 sps:$4 sm:$0xff]  }
  0x77   : > { %450 = vmatprep.subr.bf16.mxu0 %v1000_v3  ;;  %v1009_v9 = vld [vmem:[%s1446_s26 + $0x44] ss:$8 sps:$4 sm:$0xff]   ;;  %s1461_s13 = scalar_lea.vmem [#allocation8], %s843_s14  ;;  %v1011_v11 = vld [vmem:[%s1446_s26 + $0x40] ss:$8 sps:$4 sm:$0xff]   ;;  %v1021_v21 = vld [vmem:[#allocation3] sm:$0xff]  }
  0x78   : > { %v1022_v10 = vld [vmem:[%s1461_s13 + $0x40] sm:$0xff]   ;;  %v1024_v13 = vld [vmem:[%s1461_s13 + $0x48] sm:$0xff]   ;;  %v1012_v14 = vld [vmem:[%s1446_s26 + $0x54] ss:$8 sps:$4 sm:$0xff]   ;;  %s845_s16 = sshll.u32 %s1210_s21, 1  ;;  %v353_v35 = vshrl.u32 %v352_v34, 7 }
  0x79   : > { %v1023_v12 = vld [vmem:[%s1461_s13] sm:$0xff]   ;;  %889 = vmatprep.subr.bf16.mxu1 %v1022_v10  ;;  %v1025_v15 = vld [vmem:[%s1461_s13 + $0x8] sm:$0xff]   ;;  %v1014_v16 = vld [vmem:[%s1446_s26 + $0x50] ss:$8 sps:$4 sm:$0xff]   ;;  %p325_p6 = scmp.lt.s32.totalorder %s845_s16, 3  ;;  %p879_p0 = scmp.ne.s32.totalorder %s1210_s21, 0 }
  0x7a   : > { %451 = vmatpush1.bf16.msra.mxu0 %v1002_v4  ;;  %890 = vmatpush3.bf16.msra.mxu1 %v1023_v12  ;;  %v1015_v17 = vld [vmem:[%s1446_s26 + $0x64] ss:$8 sps:$4 sm:$0xff]   ;;  %v1017_v18 = vld [vmem:[%s1446_s26 + $0x60] ss:$8 sps:$4 sm:$0xff]   ;;  %v1018_v19 = vld [vmem:[%s1446_s26 + $0x74] ss:$8 sps:$4 sm:$0xff]  }
  0x7b   : > { %452 = vmatprep.subr.bf16.mxu0 %v1003_v5  ;;  %891 = vmatprep.subr.bf16.mxu1 %v1024_v13  ;;  %v1020_v20 = vld [vmem:[%s1446_s26 + $0x70] ss:$8 sps:$4 sm:$0xff]   ;;  %v1030_v26 = vld [vmem:[%s1461_s13 + $0x60] sm:$0xff]   ;;  %v1032_v28 = vld [vmem:[%s1461_s13 + $0x68] sm:$0xff]   ;;  %s1570_s16 = smov (!%p325_p6, %s845_s16), 3  ;;  %v354_v36 = vsub.s32 0, %v353_v35 }
  0x7c   : > { %v1026_v22 = vld [vmem:[%s1461_s13 + $0x50] sm:$0xff]   ;;  %v1028_v24 = vld [vmem:[%s1461_s13 + $0x58] sm:$0xff]   ;;  %v1031_v27 = vld [vmem:[%s1461_s13 + $0x20] sm:$0xff]   ;;  %s327_s7 = scalar_lea.vmem %s1539_s2, %s1570_s16  ;;  %v358_v38 = vsub.s32 1, %v353_v35 }
  0x7d   : > { %v1027_v23 = vld [vmem:[%s1461_s13 + $0x10] sm:$0xff]   ;;  %v1029_v25 = vld [vmem:[%s1461_s13 + $0x18] sm:$0xff]   ;;  %v1033_v29 = vld [vmem:[%s1461_s13 + $0x28] sm:$0xff]  }
  0x7e   : > { %453 = vmatpush1.bf16.msra.mxu0 %v1005_v6  ;;  %892 = vmatpush3.bf16.msra.mxu1 %v1025_v15  ;;  %v1034_v30 = vld [vmem:[%s1461_s13 + $0x70] sm:$0xff]   ;;  %v1036_v32 = vld [vmem:[%s1461_s13 + $0x78] sm:$0xff]   ;;  %v350_v37 = vld [vmem:[%s327_s7] sm:$0x3] }
  0x7f   : > { %454 = vmatprep.subr.bf16.mxu0 %v1006_v7  ;;  %893 = vmatprep.subr.bf16.mxu1 %v1026_v22  ;;  %v1035_v31 = vld [vmem:[%s1461_s13 + $0x30] sm:$0xff]   ;;  %v1037_v33 = vld [vmem:[%s1461_s13 + $0x38] sm:$0xff]   ;;  %v355_v39 = vrot.slane %v350_v37, %v354_v36  ;;  %v359_v40 = vrot.slane %v350_v37, %v358_v38  ;;  %v880_v13 = vld [vmem:[%s1541_s4] ss:$0 sm:$0xff] (!%p879_p0) }
  0x82   : > { %455 = vmatpush1.bf16.msra.mxu0 %v1008_v8  ;;  %894 = vmatpush3.bf16.msra.mxu1 %v1027_v23 }
  0x83   : > { %456 = vmatprep.subr.bf16.mxu0 %v1009_v9  ;;  %895 = vmatprep.subr.bf16.mxu1 %v1028_v24 }
  0x86   : > { %457 = vmatpush1.bf16.msra.mxu0 %v1011_v11  ;;  %896 = vmatpush3.bf16.msra.mxu1 %v1029_v25 }
  0x87   : > { %458 = vmatprep.subr.bf16.mxu0 %v1012_v14  ;;  %897 = vmatprep.subr.bf16.mxu1 %v1030_v26 }
  0x8a   : > { %459 = vmatpush1.bf16.msra.mxu0 %v1014_v16  ;;  %898 = vmatpush3.bf16.msra.mxu1 %v1031_v27 }
  0x8b   : > { %460 = vmatprep.subr.bf16.mxu0 %v1015_v17  ;;  %899 = vmatprep.subr.bf16.mxu1 %v1032_v28 }
  0x8e   : > { %461 = vmatpush1.bf16.msra.mxu0 %v1017_v18  ;;  %900 = vmatpush3.bf16.msra.mxu1 %v1033_v29 }
  0x8f   : > { %462 = vmatprep.subr.bf16.mxu0 %v1018_v19  ;;  %901 = vmatprep.subr.bf16.mxu1 %v1034_v30 }
  0x92   : > { %463 = vmatpush1.bf16.msra.mxu0 %v1020_v20  ;;  %902 = vmatpush3.bf16.msra.mxu1 %v1035_v31 }
  0x93   : > { %903 = vmatprep.subr.bf16.mxu1 %v1036_v32 }
  0x95   : > { %481 = vmatmul.mubr.bf16.vlgmr.msra.gmra.mrb[0].mxu0 %v1021_v21 }
  0x96   : > { %904 = vmatpush3.bf16.msra.mxu1 %v1037_v33 }
 0x168   : > { %v482_v41 = vpop.f32.mrb[0].mxu0 }
 0x169   : > { %v483_v42 = vadd.f32 %v482_v41, %v355_v39  ;;  %v484_v43 = vpop.f32.mrb[1].mxu0 }
 0x16a   : > { %v485_v44 = vadd.f32 %v484_v43, %v359_v40  ;;  %v486_v45 = vpop.f32.mrb[2].mxu0 }
 0x16b   : > { %v495_v46 = vmul.f32 0.70710677, %v483_v42  ;;  %v487_v47 = vadd.f32 %v486_v45, %v355_v39  ;;  %v488_v48 = vpop.f32.mrb[3].mxu0  ;;  %v491_v59 = vmul.f32 0.5, %v483_v42 }
 0x16c   : > { %v496_v49 = vmul.f32 0.70710677, %v485_v44  ;;  %v489_v50 = vadd.f32 %v488_v48, %v359_v40  ;;  %v492_v62 = vmul.f32 0.5, %v485_v44 }
 0x16d   : > { %1038 = verf.f32 %v495_v46  ;;  %v497_v51 = vmul.f32 0.70710677, %v487_v47  ;;  %v493_v60 = vmul.f32 0.5, %v487_v47 }
 0x16e   : > { %1040 = verf.f32 %v496_v49  ;;  %v498_v52 = vmul.f32 0.70710677, %v489_v50  ;;  %v494_v63 = vmul.f32 0.5, %v489_v50 }
 0x16f   : > { %1042 = verf.f32 %v497_v51 }
 0x170   : > { %1044 = verf.f32 %v498_v52 }
 0x177   : > { %v1039_v53 = vpop.eup %1038 }
 0x178   : > { %v1041_v54 = vpop.eup %1040  ;;  %v503_v55 = vadd.f32 1.0, %v1039_v53 }
 0x179   : > { %v1043_v56 = vpop.eup %1042  ;;  %v504_v57 = vadd.f32 1.0, %v1041_v54 }
 0x17a   : > { %v1045_v58 = vpop.eup %1044  ;;  %v505_v61 = vadd.f32 1.0, %v1043_v56  ;;  %v507_v1 = vmul.f32 %v503_v55, %v491_v59 }
 0x17b   : > { %v506_v0 = vadd.f32 1.0, %v1045_v58  ;;  %v508_v3 = vmul.f32 %v504_v57, %v492_v62 }
 0x17c   : > { %v509_v2 = vmul.f32 %v505_v61, %v493_v60 }
 0x17d   : > { %v510_v4 = vmul.f32 %v506_v0, %v494_v63 }
 0x17e   : > { %v511_v5 = vpack.c.bf16 %v509_v2, %v507_v1 }
 0x17f   : > { %v512_v6 = vpack.c.bf16 %v510_v4, %v508_v3 }
 0x181   : > { %673 = vmatprep.mubr.bf16.mxu1 %v512_v6 }
 0x182   : > { %674 = vmatmul.mubr.bf16.vlgmr.msra.gmra.mrb[0].mxu1 %v511_v5 }
 0x253   : > { %685 = sbr.rel (%p879_p0) target bundleno = 606 (0x25e), region = 56 }
 0x255   : > { %v905_v7 = vpop.f32.mrb[0].mxu1 }
 0x256   : > { %v906_v8 = vpop.f32.mrb[1].mxu1 }
 0x257   : > { %v907_v9 = vadd.f32 %v906_v8, %v905_v7  ;;  %v908_v10 = vpop.f32.mrb[2].mxu1 }
 0x258   : > { %v909_v11 = vpop.f32.mrb[3].mxu1 }
 0x259   : > { %v910_v12 = vadd.f32 %v909_v11, %v908_v10  ;;  %v693_v14 = vadd.f32 (!%p879_p0), %v907_v9, %v880_v13 }
 0x25b   : > { %v694_v15 = vadd.f32 %v910_v12, %v880_v13  ;;  %695 = vst [vmem:[#allocation2] sm:$0xff] %v693_v14 }
 0x25d   : > { %696 = vst [vmem:[#allocation2 + $0x8] sm:$0xff] %v694_v15 }
 0x25e PF: > { %p881_p5 = scmp.le.s32.totalorder %s1210_s21, 0 }
 0x260   : > { %700 = sbr.rel (%p881_p5) target bundleno = 616 (0x268), region = 60 }
 0x262   : > { %v701_v16 = vld [vmem:[#allocation2] sm:$0xff] (!%p881_p5) }
 0x263   : > { %v703_v18 = vadd.f32 (!%p881_p5), %v907_v9, %v701_v16 }
 0x264   : > { %v702_v17 = vld [vmem:[#allocation2 + $0x8] sm:$0xff] (!%p881_p5) }
 0x265   : > { %v704_v19 = vadd.f32 (!%p881_p5), %v910_v12, %v702_v17  ;;  %705 = vst [vmem:[#allocation2] sm:$0xff] (!%p881_p5), %v703_v18 }
 0x267   : > { %706 = vst [vmem:[#allocation2 + $0x8] sm:$0xff] %v704_v19 }
 0x268 PF: > { %p882_p1 = scmp.ne.s32.totalorder %s1210_s21, 1 }
 0x26a   : > { %710 = sbr.rel (%p882_p1) target bundleno = 625 (0x271), region = 64 }
 0x26d   : > { %v711_v20 = vld [vmem:[#allocation2] sm:$0xff] (!%p882_p1) }
 0x26e   : > { %v712_v21 = vld [vmem:[#allocation2 + $0x8] sm:$0xff] (!%p882_p1)  ;;  %713 = vst [vmem:[#allocation9] sm:$0xff] (!%p882_p1), %v711_v20 }
 0x26f   : > { %714 = vst [vmem:[#allocation9 + $0x8] sm:$0xff] (!%p882_p1), %v712_v21 }
 0x271 PF: > { %p937_p4 = scmp.eq.s32.totalorder %s1351_s15, 1  ;;  %s1229_s27 = smov [#allocation9]  }
 0x272   : > { %s724_s6 = sshll.u32 %s1229_s27, 4  ;;  %s725_s6 = int_to_ptr.vmem [resolvable:$true] %s724_s6 }
 0x273   : > { %s1134_s12 = scalar_lea.vmem %s725_s6, 256  ;;  %p1141_p7 = scmp.lt.s32.totalorder %s725_s6, %s725_s6 }
 0x274   : > { %p1135_p8 = scmp.ne.s32.totalorder %s725_s6, %s1134_s12  ;;  %p1142_p9 = scmp.lt.s32.totalorder %s1134_s12, %s1134_s12 }
 0x276   : > { %p1136_p13 = pnand %p1135_p8, %p937_p4  ;;  %p1143_p3 = por %p1142_p9, %p1141_p7 }
 0x278   : > { %p1137_p2 = pneg %p1136_p13 }
 0x27a   : > { %p1144_p11 = pnand %p1143_p3, %p1137_p2 }
 0x27c   : > { %1147 = shalt.err (!%p1144_p11)
}
 0x27d   : > { %s1148_s29 = scalar_lea.hbm %s1542_s5, 256 }
 0x27e   : > { %p1149_p12 = scmp.ne.s32.totalorder %s1542_s5, %s1148_s29  ;;  %p1154_p0 = scmp.lt.u32.totalorder %s1148_s29, %s1542_s5 }
 0x280   : > { %p1150_p10 = pnand %p1149_p12, %p937_p4 }
 0x282   : > { %p1151_p6 = pneg %p1150_p10 }
 0x284   : > { %p1156_p5 = pnand %p1154_p0, %p1151_p6 }
 0x286   : > { %1159 = shalt.err (!%p1156_p5)
}
 0x287   : > { %s1230_s9 = smov 128   ;;  %s1231_s26 = smov 8  }
 0x288   : > { %920 = dma.vmem_to_hbm [thread:$0]  (%p937_p4), %s725_s6, 256, %s1542_s5, [#allocation5], %s1230_s9, %s1230_s9, %s1231_s26  }
 0x289   : > { %1193 = dma.done.wait (%p937_p4), [#allocation5], 256  }
 0x28a   : > { %1195 = vsyncadd (%p937_p4), [#allocation5], 4294967040 }
 0x28b PF: > { %s20_s23 = sadd.s32 1, %s1218_s23   ;;  %s1562_s18 = smov %s1202_s19 }
 0x28c   : > { %p17_p1 = scmp.ge.s32.totalorder %s20_s23, 4   ;;  %s1563_s19 = smov %s1206_s20 }
 0x28d   : > { %s1564_s20 = smov %s1306_s30  ;;  %s1565_s21 = smov %s1214_s22 }
 0x28e   : > { %s1566_s22 = smov %s1568_s24  ;;  %19 = sbr.rel (!%p17_p1) target bundleno = 8 (0x8), region = 110 }
 0x295   :  { %740 = vsyncpa [#allocation4], 1 }
 0x296   :  { %742 = vsyncpa [#allocation4 + $0x1], 1 }
 0x297   :  { %743 = vsyncpa [#allocation7], 1 }
 0x298   :  { %745 = vsyncpa [#allocation7 + $0x1], 1 }
 0x299   :  { %746 = vsyncpa [#allocation5], 1 }
 0x29a   :  { %748 = vsyncpa [#allocation5 + $0x1], 1 }

</bundles_post_ra>
